<compile_context>
chip_gen: v6e
topology: v6e:2x2x1
jax: 0.10.0
libtpu: 0.0.40
codegen_flags: <defaults>
</compile_context>

<pallas_src>
import jax
import jax.numpy as jnp
from jax.experimental import pallas as pl
from jax.experimental.pallas import tpu as pltpu


def _round_up(n, m):
    return ((n + m - 1) // m) * m


def _block_diag(blocks):
    """Block-diagonal matrix from equally-shaped 2-D blocks (built in XLA)."""
    r, c = blocks[0].shape
    n = len(blocks)
    out = jnp.zeros((n * r, n * c), blocks[0].dtype)
    for s, blk in enumerate(blocks):
        out = out.at[s * r:(s + 1) * r, s * c:(s + 1) * c].set(blk)
    return out


def critic_kernel(xT_ref,            # (state_dim, tb)              f32
                  w1T_ref, b1_ref,   # (n*64, state_dim), (n*64, 1)
                  w2T_ref, b2_ref,   # (n*32, n*64),      (n*32, 1)
                  w3T_ref, b3_ref,   # (n,    n*32),      (n, 1)
                  o_ref):            # (1, tb)
    n_states = w3T_ref.shape[0]
    d = xT_ref.shape[0]
    xT = xT_ref[...]                                           # (D, tb)
    tb = xT.shape[1]

    # Three fused, lane-dense matmuls (N = tb lanes) covering all states.
    h1 = jnp.dot(w1T_ref[...], xT, preferred_element_type=jnp.float32)
    h1 = jnp.maximum(h1 + b1_ref[...], 0.0)                    # (n*64, tb)
    h2 = jnp.dot(w2T_ref[...], h1, preferred_element_type=jnp.float32)
    h2 = jnp.maximum(h2 + b2_ref[...], 0.0)                    # (n*32, tb)
    vals = jnp.dot(w3T_ref[...], h2, preferred_element_type=jnp.float32)
    vals = vals + b3_ref[...]                                  # (n, tb): all nets' outputs

    # Per-row network id from the last feature (lives on the lane axis).
    # floor == int() truncation for the valid non-negative id range; clamp for
    # padded rows / robustness (torch would raise on an out-of-range id).
    sid = jnp.clip(jnp.floor(xT[d - 1:d, :]), 0.0,
                   float(n_states - 1)).astype(jnp.int32)      # (1, tb)
    row = jax.lax.broadcasted_iota(jnp.int32, (n_states, tb), 0)
    sel = jnp.where(row == sid, vals, 0.0)                     # one-hot mask
    o_ref[...] = jnp.sum(sel, axis=0, keepdims=True)           # (1, tb), lane-dense


def _choose_tile(B, tile_b):
    tb = min(tile_b, _round_up(B, 128))
    tb = _round_up(tb, 128)
    # v7x: when the batch spans more than one 128-row lane tile, make sure the
    # grid has >= 2 steps so the "parallel" axis is sharded across both TCs.
    if B > 128 and _round_up(B, tb) == tb:
        tb = _round_up(pl.cdiv(B, 2), 128)
    return tb


def pack_params(params):
    """Pack raw stacked per-state weights into the fused/transposed layout."""
    w1, b1, w2, b2, w3, b3 = params
    n_states, state_dim, h1d = w1.shape
    h2d = w2.shape[2]
    w1T = jnp.transpose(w1, (0, 2, 1)).reshape(n_states * h1d, state_dim)
    b1c = b1.reshape(n_states * h1d, 1)
    w2T = _block_diag([w2[s].T for s in range(n_states)])      # (n*32, n*64)
    b2c = b2.reshape(n_states * h2d, 1)
    w3T = _block_diag([w3[s].T for s in range(n_states)])      # (n,   n*32)
    b3c = b3.reshape(n_states, 1)
    return (w1T, b1c, w2T, b2c, w3T, b3c), (n_states, state_dim, h1d, h2d)


def critic_forward_batched(xb, params, *, tile_b=1024):
    """Batched forward: xb is (B, state_dim); each row's last element is its
    state id.  Returns (B, 1) f32."""
    (w1T, b1c, w2T, b2c, w3T, b3c), (n_states, state_dim, h1d, h2d) = \
        pack_params(params)

    B = xb.shape[0]
    tb = _choose_tile(B, tile_b)
    b_pad = _round_up(B, tb)
    grid = (b_pad // tb,)

    # Batch onto the lane axis (one XLA transpose, outside the kernel).
    xT = xb.T
    if b_pad != B:
        xT = jnp.pad(xT, ((0, 0), (0, b_pad - B)))

    out = pl.pallas_call(
        critic_kernel,
        out_shape=jax.ShapeDtypeStruct((1, b_pad), jnp.float32),
        grid_spec=pltpu.PrefetchScalarGridSpec(
            num_scalar_prefetch=0,
            grid=grid,
            in_specs=[
                # activations: one lane tile per grid step
                pl.BlockSpec((state_dim, tb), lambda i: (0, i)),
                # fused weights/biases: grid-invariant -> VMEM-resident
                pl.BlockSpec((n_states * h1d, state_dim), lambda i: (0, 0)),
                pl.BlockSpec((n_states * h1d, 1), lambda i: (0, 0)),
                pl.BlockSpec((n_states * h2d, n_states * h1d), lambda i: (0, 0)),
                pl.BlockSpec((n_states * h2d, 1), lambda i: (0, 0)),
                pl.BlockSpec((n_states, n_states * h2d), lambda i: (0, 0)),
                pl.BlockSpec((n_states, 1), lambda i: (0, 0)),
            ],
            out_specs=pl.BlockSpec((1, tb), lambda i: (0, i)),
        ),
        compiler_params=pltpu.CompilerParams(
            dimension_semantics=("parallel",)),   # shards batch across v7x TCs
    )(xT, w1T, b1c, w2T, b2c, w3T, b3c)

    return out[0, :B].reshape(B, 1)


def critic_forward(x, params, *, use_pallas=True):
    """Original module semantics: x is (state_dim,) with x[-1] == state id.
    Returns (1,) f32.

    For one-off single-row calls the Pallas launch + weight DMA dwarfs the
    ~5 KFLOP of work; set use_pallas=False (pure-XLA dynamic-index path) or
    batch requests through critic_forward_batched in that serving pattern.
    """
    if use_pallas:
        return critic_forward_batched(x[None, :], params)[0]
    return critic_forward_ref(x, params)


def init_params(key, n_states, state_dim):
    """Deterministic synthetic weights matching the module's shapes
    (stored as (in_dim, out_dim) so x @ W matches torch's x @ W.T)."""
    # TODO(synk): the original module loads 'critic_base.weights' from disk;
    # synthetic deterministic weights are used here instead (no file I/O).
    ks = jax.random.split(key, 6)
    w1 = jax.random.normal(ks[0], (n_states, state_dim, 64), jnp.float32) * 0.1
    b1 = jax.random.normal(ks[1], (n_states, 64), jnp.float32) * 0.1
    w2 = jax.random.normal(ks[2], (n_states, 64, 32), jnp.float32) * 0.1
    b2 = jax.random.normal(ks[3], (n_states, 32), jnp.float32) * 0.1
    w3 = jax.random.normal(ks[4], (n_states, 32, 1), jnp.float32) * 0.1
    b3 = jax.random.normal(ks[5], (n_states, 1), jnp.float32) * 0.1
    return (w1, b1, w2, b2, w3, b3)


def critic_forward_ref(x, params):
    """Pure-JAX reference (single row) for verification."""
    w1, b1, w2, b2, w3, b3 = params
    n_states = w1.shape[0]
    i = jnp.clip(jnp.floor(x[-1]), 0.0, float(n_states - 1)).astype(jnp.int32)
    h = jnp.maximum(x @ w1[i] + b1[i], 0.0)
    h = jnp.maximum(h @ w2[i] + b2[i], 0.0)
    return h @ w3[i] + b3[i]


if __name__ == "__main__":
    state_dim = 8
    n_states = 3
    batch = 300          # spans >1 lane tile -> exercises the 2-step grid path

    key = jax.random.PRNGKey(0)
    kp, kx, ks = jax.random.split(key, 3)

    params = init_params(kp, n_states, state_dim)

    # Batch of inputs: random features, last element = integer state id.
    xb = jax.random.normal(kx, (batch, state_dim), jnp.float32)
    ids = jax.random.randint(ks, (batch,), 0, n_states).astype(jnp.float32)
    xb = xb.at[:, -1].set(ids)

    # Batched Pallas path.
    out_b = jax.block_until_ready(critic_forward_batched(xb, params))
    ref_b = jax.vmap(lambda r: critic_forward_ref(r, params))(xb)
    assert out_b.shape == (batch, 1), out_b.shape
    assert jnp.allclose(out_b, ref_b, atol=1e-4, rtol=1e-4), (out_b, ref_b)

    # Small-tile path (explicit tile_b) still correct.
    out_s = jax.block_until_ready(
        critic_forward_batched(xb[:16], params, tile_b=128))
    assert jnp.allclose(out_s, ref_b[:16], atol=1e-4, rtol=1e-4)

    # Original single-vector module semantics (through the kernel).
    x1 = xb[3]
    out1 = jax.block_until_ready(critic_forward(x1, params))
    ref1 = critic_forward_ref(x1, params)
    assert out1.shape == (1,), out1.shape
    assert jnp.allclose(out1, ref1, atol=1e-4, rtol=1e-4), (out1, ref1)

    # Pure-XLA single-row fallback (serving fast path).
    out1f = jax.block_until_ready(critic_forward(x1, params, use_pallas=False))
    assert jnp.allclose(out1f, ref1, atol=1e-5, rtol=1e-5)

    print("KERNEL_OK")
</pallas_src>

<mosaic_0001>
module attributes {stable_mosaic.version = 11 : i64} {
  func.func @critic_kernel(%arg0: i32, %arg1: memref<8x256xf32, #tpu.memory_space<vmem>>, %arg2: memref<192x8xf32, #tpu.memory_space<vmem>>, %arg3: memref<192x1xf32, #tpu.memory_space<vmem>>, %arg4: memref<96x192xf32, #tpu.memory_space<vmem>>, %arg5: memref<96x1xf32, #tpu.memory_space<vmem>>, %arg6: memref<3x96xf32, #tpu.memory_space<vmem>>, %arg7: memref<3x1xf32, #tpu.memory_space<vmem>>, %arg8: memref<1x256xf32, #tpu.memory_space<vmem>>) attributes {dimension_semantics = [#tpu.dimension_semantics<parallel>], iteration_bounds = array<i64: 2>, scalar_prefetch = 0 : i64, scratch_operands = 0 : i64, tpu.core_type = #tpu.core_type<tc>, window_params = [{transform_indices = @transform_0, window_bounds = array<i64: 8, 256>}, {pipeline_mode = #tpu.pipeline_mode<synchronous>, transform_indices = @transform_1, window_bounds = array<i64: 192, 8>}, {pipeline_mode = #tpu.pipeline_mode<synchronous>, transform_indices = @transform_2, window_bounds = array<i64: 192, 1>}, {pipeline_mode = #tpu.pipeline_mode<synchronous>, transform_indices = @transform_3, window_bounds = array<i64: 96, 192>}, {pipeline_mode = #tpu.pipeline_mode<synchronous>, transform_indices = @transform_4, window_bounds = array<i64: 96, 1>}, {pipeline_mode = #tpu.pipeline_mode<synchronous>, transform_indices = @transform_5, window_bounds = array<i64: 3, 96>}, {pipeline_mode = #tpu.pipeline_mode<synchronous>, transform_indices = @transform_6, window_bounds = array<i64: 3, 1>}, {transform_indices = @transform_7, window_bounds = array<i64: 1, 256>}]} {
    %c0 = arith.constant 0 : index
    %c0_0 = arith.constant 0 : index
    %0 = vector.load %arg1[%c0, %c0_0] : memref<8x256xf32, #tpu.memory_space<vmem>>, vector<8x256xf32>
    %c0_1 = arith.constant 0 : index
    %c0_2 = arith.constant 0 : index
    %1 = vector.load %arg2[%c0_1, %c0_2] : memref<192x8xf32, #tpu.memory_space<vmem>>, vector<192x8xf32>
    %cst = arith.constant dense<0.000000e+00> : vector<192x256xf32>
    %2 = tpu.matmul %1, %0, %cst {dimension_numbers = #tpu.dot_dimension_numbers<[1], [0], [0], [1], [0, 0, 1, 1], [], []>} : vector<192x8xf32>, vector<8x256xf32>, vector<192x256xf32> -> vector<192x256xf32>
    %c0_3 = arith.constant 0 : index
    %c0_4 = arith.constant 0 : index
    %3 = vector.load %arg3[%c0_3, %c0_4] : memref<192x1xf32, #tpu.memory_space<vmem>>, vector<192x1xf32>
    %4 = vector.broadcast %3 : vector<192x1xf32> to vector<192x256xf32>
    %5 = arith.addf %2, %4 : vector<192x256xf32>
    %cst_5 = arith.constant 0.000000e+00 : f32
    %6 = vector.broadcast %cst_5 : f32 to vector<192x256xf32>
    %7 = arith.maximumf %5, %6 : vector<192x256xf32>
    %c0_6 = arith.constant 0 : index
    %c0_7 = arith.constant 0 : index
    %8 = vector.load %arg4[%c0_6, %c0_7] : memref<96x192xf32, #tpu.memory_space<vmem>>, vector<96x192xf32>
    %cst_8 = arith.constant dense<0.000000e+00> : vector<96x256xf32>
    %9 = tpu.matmul %8, %7, %cst_8 {dimension_numbers = #tpu.dot_dimension_numbers<[1], [0], [0], [1], [0, 0, 1, 1], [], []>} : vector<96x192xf32>, vector<192x256xf32>, vector<96x256xf32> -> vector<96x256xf32>
    %c0_9 = arith.constant 0 : index
    %c0_10 = arith.constant 0 : index
    %10 = vector.load %arg5[%c0_9, %c0_10] : memref<96x1xf32, #tpu.memory_space<vmem>>, vector<96x1xf32>
    %11 = vector.broadcast %10 : vector<96x1xf32> to vector<96x256xf32>
    %12 = arith.addf %9, %11 : vector<96x256xf32>
    %cst_11 = arith.constant 0.000000e+00 : f32
    %13 = vector.broadcast %cst_11 : f32 to vector<96x256xf32>
    %14 = arith.maximumf %12, %13 : vector<96x256xf32>
    %c0_12 = arith.constant 0 : index
    %c0_13 = arith.constant 0 : index
    %15 = vector.load %arg6[%c0_12, %c0_13] : memref<3x96xf32, #tpu.memory_space<vmem>>, vector<3x96xf32>
    %cst_14 = arith.constant dense<0.000000e+00> : vector<3x256xf32>
    %16 = tpu.matmul %15, %14, %cst_14 {dimension_numbers = #tpu.dot_dimension_numbers<[1], [0], [0], [1], [0, 0, 1, 1], [], []>} : vector<3x96xf32>, vector<96x256xf32>, vector<3x256xf32> -> vector<3x256xf32>
    %c0_15 = arith.constant 0 : index
    %c0_16 = arith.constant 0 : index
    %17 = vector.load %arg7[%c0_15, %c0_16] : memref<3x1xf32, #tpu.memory_space<vmem>>, vector<3x1xf32>
    %18 = vector.broadcast %17 : vector<3x1xf32> to vector<3x256xf32>
    %19 = arith.addf %16, %18 : vector<3x256xf32>
    %20 = vector.extract_strided_slice %0 {offsets = [7, 0], sizes = [1, 256], strides = [1, 1]} : vector<8x256xf32> to vector<1x256xf32>
    %21 = math.floor %20 : vector<1x256xf32>
    %cst_17 = arith.constant 0.000000e+00 : f32
    %cst_18 = arith.constant 2.000000e+00 : f32
    %22 = vector.broadcast %cst_17 : f32 to vector<1x256xf32>
    %23 = arith.maximumf %22, %21 : vector<1x256xf32>
    %24 = vector.broadcast %cst_18 : f32 to vector<1x256xf32>
    %25 = arith.minimumf %24, %23 : vector<1x256xf32>
    %26 = arith.fptosi %25 : vector<1x256xf32> to vector<1x256xi32>
    %27 = tpu.iota {dimensions = array<i32: 0>} : vector<3x256xi32>
    %28 = vector.broadcast %26 : vector<1x256xi32> to vector<3x256xi32>
    %29 = arith.cmpi eq, %27, %28 : vector<3x256xi32>
    %cst_19 = arith.constant 0.000000e+00 : f32
    %30 = vector.broadcast %cst_19 : f32 to vector<3x256xf32>
    %31 = arith.select %29, %19, %30 : vector<3x256xi1>, vector<3x256xf32>
    %cst_20 = arith.constant dense<0.000000e+00> : vector<256xf32>
    %32 = vector.multi_reduction <add>, %31, %cst_20 [0] : vector<3x256xf32> to vector<256xf32>
    %33 = vector.shape_cast %32 : vector<256xf32> to vector<1x256xf32>
    %c0_21 = arith.constant 0 : index
    %c0_22 = arith.constant 0 : index
    %34 = vector.load %arg8[%c0_21, %c0_22] : memref<1x256xf32, #tpu.memory_space<vmem>>, vector<1x256xf32>
    tpu.vector_store %arg8[%c0_21, %c0_22], %33 {strides = array<i32>} : memref<1x256xf32, #tpu.memory_space<vmem>>, vector<1x256xf32>,
    return
  }
  func.func @transform_0(%arg0: i32) -> (i32, i32) {
    %c0_i32 = arith.constant 0 : i32
    %c0_i32_0 = arith.constant 0 : i32
    return %c0_i32, %arg0 : i32, i32
  }
  func.func @transform_1(%arg0: i32) -> (i32, i32) {
    %c0_i32 = arith.constant 0 : i32
    %c0_i32_0 = arith.constant 0 : i32
    %c0_i32_1 = arith.constant 0 : i32
    return %c0_i32, %c0_i32_0 : i32, i32
  }
  func.func @transform_2(%arg0: i32) -> (i32, i32) {
    %c0_i32 = arith.constant 0 : i32
    %c0_i32_0 = arith.constant 0 : i32
    %c0_i32_1 = arith.constant 0 : i32
    return %c0_i32, %c0_i32_0 : i32, i32
  }
  func.func @transform_3(%arg0: i32) -> (i32, i32) {
    %c0_i32 = arith.constant 0 : i32
    %c0_i32_0 = arith.constant 0 : i32
    %c0_i32_1 = arith.constant 0 : i32
    return %c0_i32, %c0_i32_0 : i32, i32
  }
  func.func @transform_4(%arg0: i32) -> (i32, i32) {
    %c0_i32 = arith.constant 0 : i32
    %c0_i32_0 = arith.constant 0 : i32
    %c0_i32_1 = arith.constant 0 : i32
    return %c0_i32, %c0_i32_0 : i32, i32
  }
  func.func @transform_5(%arg0: i32) -> (i32, i32) {
    %c0_i32 = arith.constant 0 : i32
    %c0_i32_0 = arith.constant 0 : i32
    %c0_i32_1 = arith.constant 0 : i32
    return %c0_i32, %c0_i32_0 : i32, i32
  }
  func.func @transform_6(%arg0: i32) -> (i32, i32) {
    %c0_i32 = arith.constant 0 : i32
    %c0_i32_0 = arith.constant 0 : i32
    %c0_i32_1 = arith.constant 0 : i32
    return %c0_i32, %c0_i32_0 : i32, i32
  }
  func.func @transform_7(%arg0: i32) -> (i32, i32) {
    %c0_i32 = arith.constant 0 : i32
    %c0_i32_0 = arith.constant 0 : i32
    return %c0_i32, %arg0 : i32, i32
  }
}

</mosaic_0001>

<bundles_post_ra>
// kernel: tpu_custom_call.1
= control target key start
LH: loop header
LB: loop body
LE: loop exit
PB: predicated region body
PF: predicated region fallthrough
CT: control target
= control target key end

     0   :  { %12 = vsyncpa [#allocation3], 0  ;;  %s2012_s0 = inlined_call_operand.vmem [shape: f32[8,512], index: 0, kind: input, shape index: {}]   ;;  %s2013_s1 = inlined_call_operand.vmem [shape: f32[192,8], index: 1, kind: input, shape index: {}]   ;;  %s2014_s2 = inlined_call_operand.vmem [shape: f32[192,1], index: 2, kind: input, shape index: {}]   ;;  %s2015_s3 = inlined_call_operand.vmem [shape: f32[96,192], index: 3, kind: input, shape index: {}]   ;;  %s2016_s4 = inlined_call_operand.vmem [shape: f32[96,1], index: 4, kind: input, shape index: {}]   ;;  %s2017_s5 = inlined_call_operand.vmem [shape: f32[3,96], index: 5, kind: input, shape index: {}]   ;;  %s2018_s6 = inlined_call_operand.vmem [shape: f32[3,1], index: 6, kind: input, shape index: {}]   ;;  %s2019_s7 = inlined_call_operand.hbm [shape: f32[1,512], index: 7, kind: output, shape index: {}]  }
   0x1   :  { %14 = vsyncpa [#allocation3 + $0x1], 0  ;;  %s1496_s24 = smov 0   ;;  %s1498_s25 = smov 0  }
   0x2   :  { %s1500_s26 = smov 0   ;;  %s1502_s27 = smov 0  }
   0x3 LB: > { %s1517_s28 = sadd.s32 4294967295, %s1450_s27   ;;  %s1290_s29 = sadd.s32 4294967294, %s1450_s27   ;;  %s1450_s27 = sphi %s1502_s27, %s2025_s27   ;;  %s1446_s26 = sphi %s1500_s26, %s2024_s26   ;;  %s1442_s25 = sphi %s1498_s25, %s2023_s25   ;;  %s1438_s24 = sphi %s1496_s24, %s2022_s24  }
   0x4   : > { %s1521_s30 = sadd.s32 1, %s1450_s27   ;;  %s179_s8 = sadd.s32 1, %s1446_s26 }
   0x5   : > { %s176_s9 = ssub.s32 %s1450_s27, %s1521_s30  ;;  %p189_p0 = scmp.ne.s32.totalorder %s1446_s26, %s1442_s25 }
   0x6   : > { %p177_p1 = scmp.eq.s32.totalorder %s176_s9, 0  ;;  %p190_p2 = scmp.eq.s32.totalorder %s1517_s28, 1 }
   0x7   : > { %p195_p3 = scmp.ne.s32.totalorder %s1442_s25, %s1438_s24  ;;  %p196_p4 = scmp.eq.s32.totalorder %s1290_s29, 1 }
   0x8   : > { %s1532_s10 = scalar_select %p177_p1, %s1446_s26, %s179_s8  }
   0x9   : > { %p1534_p5 = por %p190_p2, %p189_p0  ;;  %p1538_p6 = por %p196_p4, %p195_p3 }
   0xa   : > { %p1293_p7 = scmp.ge.s32.totalorder %s1450_s27, 1  ;;  %p241_p8 = scmp.lt.s32.totalorder %s1450_s27, 3 }
   0xc   : > { %p242_p9 = pnand %p1293_p7, %p241_p8 }
   0xd   : > { %s1295_s13 = sshll.u32 (!%p242_p9), %s1517_s28, 1  ;;  %s1339_s21 = sshll.u32 (!%p242_p9), %s1517_s28, 5 }
   0xe   : > { %245 = sbr.rel (%p242_p9) target bundleno = 829 (0x33d), region = 48  ;;  %p274_p10 = scmp.lt.s32.totalorder (!%p242_p9), %s1295_s13, 3 }
   0xf   : > { %s1455_s16 = smov (!%p242_p9), [#allocation2]  }
  0x10   : > { %s1394_s17 = sshll.u32 (!%p242_p9), %s1455_s16, 4  ;;  %s1395_s17 = int_to_ptr.vmem [resolvable:$false] %s1394_s17 }
  0x11   : > { %s1396_s28 = scalar_lea.vmem (!%p242_p9), %s1395_s17, 64 }
  0x13   : > { %v1452_v0 = vmov 0.0   ;;  %v1453_v1 = vmov 0   ;;  %s2027_s13 = smov (!%p274_p10, %s1295_s13), 3  ;;  %v319_v2 = vld [vmem:[%s2014_s2 + $0x68] sm:$0xff]  ;;  %v321_v3 = vld [vmem:[%s2014_s2 + $0x78] sm:$0xff]  ;;  %v318_v4 = vld [vmem:[%s2014_s2 + $0x60] sm:$0xff] }
  0x14   : > { %587 = vmatprep.mubr.f32.mxu0 %v1452_v0  ;;  %1387 = vset.pattern.permute.xlu1 %v1453_v1  ;;  %s1296_s18 = sshll.u32 %s2027_s13, 3  ;;  %v320_v5 = vld [vmem:[%s2014_s2 + $0x70] sm:$0xff]  ;;  %v282_v8 = vld [vmem:[%s2013_s1] sm:$0xff]  ;;  %vm450_vm0 = vcmask 64512   ;;  %v317_v10 = vld [vmem:[%s2014_s2 + $0x58] sm:$0xff]  ;;  %vm876_vm1 = vcmask 523264   ;;  %s1229_s13 = scalar_lea.hbm %s2019_s7, %s1339_s21 }
  0x15   : > { %1386 = vset.pattern.permute.xlu0 %v1453_v1  ;;  %397 = vperm.xlu1 %1387, %v319_v2   ;;  %s1558_s23 = scalar_lea.vmem %s2012_s0, %s1296_s18  ;;  %v316_v9 = vld [vmem:[%s2014_s2 + $0x50] sm:$0xff]  ;;  %v283_v11 = vld [vmem:[%s2013_s1 + $0x8] sm:$0xff]  ;;  %v314_v12 = vld [vmem:[%s2014_s2 + $0x40] sm:$0xff]  ;;  %vm1081_vm2 = vcmask 785408   ;;  %vm1178_vm4 = vcmask 1042432  }
  0x16   : > { %407 = vperm.xlu0 %1386, %v321_v3   ;;  %v281_v6 = vld [vmem:[%s1558_s23 + $0x8] sm:$0xff]  ;;  %v280_v7 = vld [vmem:[%s1558_s23] sm:$0xff]  ;;  %v284_v14 = vld [vmem:[%s2013_s1 + $0x10] sm:$0xff] }
  0x17   : > { %553 = vmatprep.subr.mxu0 %v281_v6  ;;  %v315_v13 = vld [vmem:[%s2014_s2 + $0x48] sm:$0xff]  ;;  %v312_v15 = vld [vmem:[%s2014_s2 + $0x30] sm:$0xff]  ;;  %v313_v16 = vld [vmem:[%s2014_s2 + $0x38] sm:$0xff] }
  0x18   : > { %554 = vmatpush1.msra.mxu0 %v280_v7  ;;  %v285_v17 = vld [vmem:[%s2013_s1 + $0x18] sm:$0xff]  ;;  %v310_v18 = vld [vmem:[%s2014_s2 + $0x20] sm:$0xff]  ;;  %v311_v19 = vld [vmem:[%s2014_s2 + $0x28] sm:$0xff] }
  0x19   : > { %392 = vperm.xlu1 %1387, %v318_v4   ;;  %1297 = vmatmul.mubr.msk.f32.vlgmr.msra.gmra.mxu0 %vm450_vm0, %v282_v8  ;;  %v286_v20 = vld [vmem:[%s2013_s1 + $0x20] sm:$0xff]  ;;  %v308_v21 = vld [vmem:[%s2014_s2 + $0x10] sm:$0xff]  ;;  %v309_v22 = vld [vmem:[%s2014_s2 + $0x18] sm:$0xff] }
  0x1a   : > { %402 = vperm.xlu0 %1386, %v320_v5   ;;  %593 = vmatprep.mubr.f32.mxu0 %v1452_v0  ;;  %v287_v23 = vld [vmem:[%s2013_s1 + $0x28] sm:$0xff]  ;;  %v306_v24 = vld [vmem:[%s2014_s2] sm:$0xff]  ;;  %v288_v26 = vld [vmem:[%s2013_s1 + $0x30] sm:$0xff] }
  0x1b   : > { %v307_v25 = vld [vmem:[%s2014_s2 + $0x8] sm:$0xff]  ;;  %v328_v27 = vld [vmem:[%s2014_s2 + $0xb0] sm:$0xff]  ;;  %v329_v28 = vld [vmem:[%s2014_s2 + $0xb8] sm:$0xff] }
  0x1c   : > { %v289_v29 = vld [vmem:[%s2013_s1 + $0x38] sm:$0xff]  ;;  %v326_v30 = vld [vmem:[%s2014_s2 + $0xa0] sm:$0xff]  ;;  %v327_v31 = vld [vmem:[%s2014_s2 + $0xa8] sm:$0xff] }
  0x1d   : > { %382 = vperm.xlu1 %1387, %v316_v9   ;;  %1298 = vmatmul.mubr.msk.f32.gmra.mxu0 %vm450_vm0, %v283_v11  ;;  %v290_v32 = vld [vmem:[%s2013_s1 + $0x40] sm:$0xff]  ;;  %v324_v33 = vld [vmem:[%s2014_s2 + $0x90] sm:$0xff]  ;;  %v325_v34 = vld [vmem:[%s2014_s2 + $0x98] sm:$0xff] }
  0x1e   : > { %387 = vperm.xlu0 %1386, %v317_v10   ;;  %599 = vmatprep.mubr.f32.mxu0 %v1452_v0  ;;  %v291_v35 = vld [vmem:[%s2013_s1 + $0x48] sm:$0xff]  ;;  %v322_v36 = vld [vmem:[%s2014_s2 + $0x80] sm:$0xff]  ;;  %v292_v38 = vld [vmem:[%s2013_s1 + $0x50] sm:$0xff] }
  0x1f   : > { %v323_v37 = vld [vmem:[%s2014_s2 + $0x88] sm:$0xff]  ;;  %v814_v39 = vld [vmem:[%s2016_s4 + $0x50] sm:$0xff]  ;;  %v815_v40 = vld [vmem:[%s2016_s4 + $0x58] sm:$0xff] }
  0x20   : > { %v293_v41 = vld [vmem:[%s2013_s1 + $0x58] sm:$0xff]  ;;  %v812_v42 = vld [vmem:[%s2016_s4 + $0x40] sm:$0xff]  ;;  %v813_v43 = vld [vmem:[%s2016_s4 + $0x48] sm:$0xff] }
  0x21   : > { %372 = vperm.xlu1 %1387, %v314_v12   ;;  %1299 = vmatmul.mubr.msk.f32.gmra.mxu0 %vm450_vm0, %v284_v14  ;;  %v294_v44 = vld [vmem:[%s2013_s1 + $0x60] sm:$0xff]  ;;  %v810_v45 = vld [vmem:[%s2016_s4 + $0x30] sm:$0xff]  ;;  %v811_v46 = vld [vmem:[%s2016_s4 + $0x38] sm:$0xff] }
  0x22   : > { %377 = vperm.xlu0 %1386, %v315_v13   ;;  %605 = vmatprep.mubr.f32.mxu0 %v1452_v0  ;;  %v295_v47 = vld [vmem:[%s2013_s1 + $0x68] sm:$0xff]  ;;  %v808_v48 = vld [vmem:[%s2016_s4 + $0x20] sm:$0xff]  ;;  %v296_v50 = vld [vmem:[%s2013_s1 + $0x70] sm:$0xff] }
  0x23   : > { %v809_v49 = vld [vmem:[%s2016_s4 + $0x28] sm:$0xff]  ;;  %v806_v51 = vld [vmem:[%s2016_s4 + $0x10] sm:$0xff]  ;;  %v807_v52 = vld [vmem:[%s2016_s4 + $0x18] sm:$0xff] }
  0x24   : > { %v297_v53 = vld [vmem:[%s2013_s1 + $0x78] sm:$0xff]  ;;  %v804_v54 = vld [vmem:[%s2016_s4] sm:$0xff]  ;;  %v805_v55 = vld [vmem:[%s2016_s4 + $0x8] sm:$0xff] }
  0x25   : > { %362 = vperm.xlu1 %1387, %v312_v15   ;;  %1300 = vmatmul.mubr.msk.f32.gmra.mxu0 %vm450_vm0, %v285_v17  ;;  %v298_v56 = vld [vmem:[%s2013_s1 + $0x80] sm:$0xff]  ;;  %v299_v58 = vld [vmem:[%s2013_s1 + $0x88] sm:$0xff]  ;;  %v300_v59 = vld [vmem:[%s2013_s1 + $0x90] sm:$0xff] }
  0x26   : > { %367 = vperm.xlu0 %1386, %v313_v16   ;;  %611 = vmatprep.mubr.f32.mxu0 %v1452_v0  ;;  %v1075_v57 = vld [vmem:[%s2018_s6] sm:$0x7]  ;;  %v301_v60 = vld [vmem:[%s2013_s1 + $0x98] sm:$0xff]  ;;  %v303_v62 = vld [vmem:[%s2013_s1 + $0xa8] sm:$0xff] }
  0x27   : > { %v302_v61 = vld [vmem:[%s2013_s1 + $0xa0] sm:$0xff]  ;;  %v304_v63 = vld [vmem:[%s2013_s1 + $0xb0] sm:$0xff]  ;;  %v305_v1 = vld [vmem:[%s2013_s1 + $0xb8] sm:$0xff] }
  0x28   : > { %v781_v2 = vld [vmem:[%s2015_s3 + $0x8] sm:$0xff] }
  0x29   : > { %352 = vperm.xlu1 %1387, %v310_v18   ;;  %1301 = vmatmul.mubr.msk.f32.gmra.mxu0 %vm450_vm0, %v286_v20 }
  0x2a   : > { %357 = vperm.xlu0 %1386, %v311_v19   ;;  %617 = vmatprep.mubr.f32.mxu0 %v1452_v0 }
  0x2b   : > { %1321 = vmatprep.mubr.msk.f32.mxu1 %vm876_vm1, %v781_v2 }
  0x2d   : > { %342 = vperm.xlu1 %1387, %v308_v21   ;;  %1302 = vmatmul.mubr.msk.f32.gmra.mxu0 %vm450_vm0, %v287_v23 }
  0x2e   : > { %347 = vperm.xlu0 %1386, %v309_v22   ;;  %623 = vmatprep.mubr.f32.mxu0 %v1452_v0 }
  0x31   : > { %332 = vperm.xlu1 %1387, %v306_v24   ;;  %1303 = vmatmul.mubr.msk.f32.gmra.mxu0 %vm450_vm0, %v288_v26 }
  0x32   : > { %337 = vperm.xlu0 %1386, %v307_v25   ;;  %629 = vmatprep.mubr.f32.mxu0 %v1452_v0 }
  0x35   : > { %442 = vperm.xlu1 %1387, %v328_v27   ;;  %1304 = vmatmul.mubr.msk.f32.gmra.mxu0 %vm450_vm0, %v289_v29 }
  0x36   : > { %447 = vperm.xlu0 %1386, %v329_v28   ;;  %635 = vmatprep.mubr.f32.mxu0 %v1452_v0 }
  0x39   : > { %432 = vperm.xlu1 %1387, %v326_v30   ;;  %1305 = vmatmul.mubr.msk.f32.gmra.mxu0 %vm450_vm0, %v290_v32 }
  0x3a   : > { %437 = vperm.xlu0 %1386, %v327_v31   ;;  %641 = vmatprep.mubr.f32.mxu0 %v1452_v0 }
  0x3d   : > { %422 = vperm.xlu1 %1387, %v324_v33   ;;  %1306 = vmatmul.mubr.msk.f32.gmra.mxu0 %vm450_vm0, %v291_v35 }
  0x3e   : > { %427 = vperm.xlu0 %1386, %v325_v34   ;;  %647 = vmatprep.mubr.f32.mxu0 %v1452_v0 }
  0x41   : > { %412 = vperm.xlu1 %1387, %v322_v36   ;;  %1307 = vmatmul.mubr.msk.f32.gmra.mxu0 %vm450_vm0, %v292_v38 }
  0x42   : > { %417 = vperm.xlu0 %1386, %v323_v37   ;;  %653 = vmatprep.mubr.f32.mxu0 %v1452_v0 }
  0x45   : > { %868 = vperm.xlu1 %1387, %v814_v39   ;;  %1308 = vmatmul.mubr.msk.f32.gmra.mxu0 %vm450_vm0, %v293_v41 }
  0x46   : > { %873 = vperm.xlu0 %1386, %v815_v40   ;;  %659 = vmatprep.mubr.f32.mxu0 %v1452_v0 }
  0x49   : > { %858 = vperm.xlu1 %1387, %v812_v42   ;;  %1309 = vmatmul.mubr.msk.f32.gmra.mxu0 %vm450_vm0, %v294_v44 }
  0x4a   : > { %863 = vperm.xlu0 %1386, %v813_v43   ;;  %665 = vmatprep.mubr.f32.mxu0 %v1452_v0 }
  0x4d   : > { %848 = vperm.xlu1 %1387, %v810_v45   ;;  %1310 = vmatmul.mubr.msk.f32.gmra.mxu0 %vm450_vm0, %v295_v47 }
  0x4e   : > { %853 = vperm.xlu0 %1386, %v811_v46   ;;  %671 = vmatprep.mubr.f32.mxu0 %v1452_v0 }
  0x51   : > { %838 = vperm.xlu1 %1387, %v808_v48   ;;  %1311 = vmatmul.mubr.msk.f32.gmra.mxu0 %vm450_vm0, %v296_v50 }
  0x52   : > { %843 = vperm.xlu0 %1386, %v809_v49   ;;  %677 = vmatprep.mubr.f32.mxu0 %v1452_v0 }
  0x55   : > { %828 = vperm.xlu1 %1387, %v806_v51   ;;  %1312 = vmatmul.mubr.msk.f32.gmra.mxu0 %vm450_vm0, %v297_v53 }
  0x56   : > { %833 = vperm.xlu0 %1386, %v807_v52   ;;  %683 = vmatprep.mubr.f32.mxu0 %v1452_v0 }
  0x59   : > { %818 = vperm.xlu1 %1387, %v804_v54   ;;  %1313 = vmatmul.mubr.msk.f32.gmra.mxu0 %vm450_vm0, %v298_v56 }
  0x5a   : > { %823 = vperm.xlu0 %1386, %v805_v55   ;;  %689 = vmatprep.mubr.f32.mxu0 %v1452_v0 }
  0x5d   : > { %1314 = vmatmul.mubr.msk.f32.gmra.mxu0 %vm450_vm0, %v299_v58 }
  0x5e   : > { %1078 = vperm.xlu0 %1386, %v1075_v57   ;;  %695 = vmatprep.mubr.f32.mxu0 %v1452_v0 }
  0x61   : > { %1315 = vmatmul.mubr.msk.f32.gmra.mxu0 %vm450_vm0, %v300_v59 }
  0x62   : > { %701 = vmatprep.mubr.f32.mxu0 %v1452_v0 }
  0x65   : > { %1316 = vmatmul.mubr.msk.f32.gmra.mxu0 %vm450_vm0, %v301_v60 }
  0x66   : > { %707 = vmatprep.mubr.f32.mxu0 %v1452_v0 }
  0x69   : > { %1317 = vmatmul.mubr.msk.f32.gmra.mxu0 %vm450_vm0, %v302_v61 }
  0x6a   : > { %713 = vmatprep.mubr.f32.mxu0 %v1452_v0 }
  0x6d   : > { %1318 = vmatmul.mubr.msk.f32.gmra.mxu0 %vm450_vm0, %v303_v62 }
  0x6e   : > { %719 = vmatprep.mubr.f32.mxu0 %v1452_v0 }
  0x71   : > { %1319 = vmatmul.mubr.msk.f32.gmra.mxu0 %vm450_vm0, %v304_v63 }
  0x72   : > { %725 = vmatprep.mubr.f32.mxu0 %v1452_v0 }
  0x75   : > { %1320 = vmatmul.mubr.msk.f32.gmra.mxu0 %vm450_vm0, %v305_v1 }
  0x90   : > { %v398_v25 = vpop.permute.xlu1 %397 }
  0x91   : > { %v408_v23 = vpop.permute.xlu0 %407 }
  0x94   : > { %v393_v30 = vpop.permute.xlu1 %392 }
  0x95   : > { %v403_v28 = vpop.permute.xlu0 %402 }
  0x98   : > { %v383_v35 = vpop.permute.xlu1 %382 }
  0x99   : > { %v388_v33 = vpop.permute.xlu0 %387 }
  0x9c   : > { %v373_v40 = vpop.permute.xlu1 %372 }
  0x9d   : > { %v378_v38 = vpop.permute.xlu0 %377 }
  0xa0   : > { %v363_v51 = vpop.permute.xlu1 %362 }
  0xa1   : > { %v368_v46 = vpop.permute.xlu0 %367 }
  0xa5   : > { %v358_v62 = vpop.permute.xlu0 %357 }
  0xd9   : > { %v1787_v3 = vpop.f32.mrf.mxu0 }
  0xdb   : > { %v1789_v4 = vpop.f32.mrf.mxu0 }
  0xdd   : > { %v1791_v5 = vpop.f32.mrf.mxu0 }
  0xdf   : > { %v1793_v6 = vpop.f32.mrf.mxu0 }
  0xe1   : > { %v1795_v7 = vpop.f32.mrf.mxu0 }
  0xe3   : > { %v1797_v8 = vpop.f32.mrf.mxu0 }
  0xe5   : > { %v1799_v9 = vpop.f32.mrf.mxu0 }
  0xe7   : > { %v1801_v10 = vpop.f32.mrf.mxu0 }
  0xe9   : > { %v1803_v11 = vpop.f32.mrf.mxu0 }
  0xeb   : > { %v1805_v12 = vpop.f32.mrf.mxu0 }
  0xed   : > { %v1807_v13 = vpop.f32.mrf.mxu0 }
  0xef   : > { %v1809_v14 = vpop.f32.mrf.mxu0 }
  0xf1   : > { %v1811_v15 = vpop.f32.mrf.mxu0 }
  0xf3   : > { %v1813_v16 = vpop.f32.mrf.mxu0 }
  0xf5   : > { %v1815_v17 = vpop.f32.mrf.mxu0 }
  0xf7   : > { %v1817_v18 = vpop.f32.mrf.mxu0 }
  0xf9   : > { %v1819_v19 = vpop.f32.mrf.mxu0 }
  0xfb   : > { %v1821_v20 = vpop.f32.mrf.mxu0 }
  0xfd   : > { %v643_v21 = vpop.f32.mrf.mxu0 }
  0xff   : > { %v645_v22 = vpop.f32.mrf.mxu0 }
 0x101   : > { %v649_v24 = vpop.f32.mrf.mxu0 }
 0x103   : > { %v651_v26 = vpop.f32.mrf.mxu0 }
 0x105   : > { %v655_v27 = vpop.f32.mrf.mxu0 }
 0x106   : > { %v656_v63 = vadd.f32 %v655_v27, %v388_v33  ;;  %v640_v27 = vadd.f32 %v1821_v20, %v373_v40  ;;  %v628_v20 = vadd.f32 %v1813_v16, %v363_v51 }
 0x107   : > { %v657_v29 = vpop.f32.mrf.mxu0 }
 0x108   : > { %v658_v60 = vadd.f32 %v657_v29, %v388_v33  ;;  %v644_v29 = vadd.f32 %v643_v21, %v378_v38 }
 0x109   : > { %v661_v31 = vpop.f32.mrf.mxu0 }
 0x10a   : > { %v662_v57 = vadd.f32 %v661_v31, %v393_v30  ;;  %v646_v31 = vadd.f32 %v645_v22, %v378_v38  ;;  %v634_v22 = vadd.f32 %v1817_v18, %v368_v46  ;;  %v632_v38 = vadd.f32 %v1815_v17, %v368_v46 }
 0x10b   : > { %v663_v32 = vpop.f32.mrf.mxu0  ;;  %v622_v18 = vadd.f32 %v1809_v14, %v358_v62  ;;  %v620_v17 = vadd.f32 %v1807_v13, %v358_v62 }
 0x10c   : > { %v664_v55 = vadd.f32 %v663_v32, %v393_v30  ;;  %v650_v32 = vadd.f32 %v649_v24, %v383_v35  ;;  %v746_v46 = vmax.f32 %v632_v38, 0.0 }
 0x10d   : > { %v667_v34 = vpop.f32.mrf.mxu0 }
 0x10e   : > { %v668_v52 = vadd.f32 %v667_v34, %v398_v25  ;;  %v756_v34 = vmax.f32 %v662_v57, 0.0  ;;  %v752_v24 = vmax.f32 %v650_v32, 0.0  ;;  %v743_v57 = vmax.f32 %v622_v18, 0.0 }
 0x10f   : > { %v669_v36 = vpop.f32.mrf.mxu0 }
 0x110   : > { %v670_v49 = vadd.f32 %v669_v36, %v398_v25  ;;  %v758_v1 = vmax.f32 %v668_v52, 0.0  ;;  %v757_v25 = vmax.f32 %v664_v55, 0.0  ;;  %v755_v36 = vmax.f32 %v658_v60, 0.0 }
 0x111   : > { %v673_v37 = vpop.f32.mrf.mxu0  ;;  %v742_v60 = vmax.f32 %v620_v17, 0.0 }
 0x112   : > { %v674_v47 = vadd.f32 %v673_v37, %v403_v28  ;;  %v759_v61 = vmax.f32 %v670_v49, 0.0  ;;  %v754_v37 = vmax.f32 %v656_v63, 0.0  ;;  %v747_v49 = vmax.f32 %v634_v22, 0.0 }
 0x113   : > { %v675_v39 = vpop.f32.mrf.mxu0 }
 0x114   : > { %v676_v44 = vadd.f32 %v675_v39, %v403_v28  ;;  %v760_v58 = vmax.f32 %v674_v47, 0.0  ;;  %v353_v28 = vpop.permute.xlu1 %352 }
 0x115   : > { %v679_v41 = vpop.f32.mrf.mxu0  ;;  %v616_v16 = vadd.f32 %v1805_v12, %v353_v28 }
 0x116   : > { %v680_v42 = vadd.f32 %v679_v41, %v408_v23  ;;  %v761_v56 = vmax.f32 %v676_v44, 0.0  ;;  %v638_v41 = vadd.f32 %v1819_v19, %v373_v40  ;;  %v626_v19 = vadd.f32 %v1811_v15, %v363_v51 }
 0x117   : > { %v681_v43 = vpop.f32.mrf.mxu0  ;;  %v614_v15 = vadd.f32 %v1803_v11, %v353_v28  ;;  %v741_v62 = vmax.f32 %v616_v16, 0.0 }
 0x118   : > { %v682_v45 = vadd.f32 %v681_v43, %v408_v23  ;;  %v762_v53 = vmax.f32 %v680_v42, 0.0  ;;  %v652_v23 = vadd.f32 %v651_v26, %v383_v35  ;;  %v348_v26 = vpop.permute.xlu0 %347  ;;  %v751_v42 = vmax.f32 %v646_v31, 0.0  ;;  %v343_v21 = vpop.permute.xlu1 %342 }
 0x119   : > { %v1823_v48 = vpop.f32.mrf.mxu0  ;;  %v750_v43 = vmax.f32 %v644_v29, 0.0  ;;  %v748_v40 = vmax.f32 %v638_v41, 0.0  ;;  %v744_v51 = vmax.f32 %v626_v19, 0.0  ;;  %v610_v14 = vadd.f32 %v1801_v10, %v348_v26 }
 0x11a   : > { %v763_v50 = vmax.f32 %v682_v45, 0.0  ;;  %v753_v33 = vmax.f32 %v652_v23, 0.0  ;;  %v749_v45 = vmax.f32 %v640_v27, 0.0  ;;  %v604_v12 = vadd.f32 %v1797_v8, %v343_v21 }
 0x11b   : > { %v1825_v54 = vpop.f32.mrf.mxu0  ;;  %v602_v63 = vadd.f32 %v1795_v7, %v343_v21  ;;  %v740_v11 = vmax.f32 %v614_v15, 0.0 }
 0x11c   : > { %913 = vmatprep.subr.mxu1 %v763_v50  ;;  %v338_v50 = vpop.permute.xlu0 %337  ;;  %v333_v55 = vpop.permute.xlu1 %332  ;;  %v737_v8 = vmax.f32 %v604_v12, 0.0  ;;  %v784_v12 = vld [vmem:[%s2015_s3 + $0x20] sm:$0xff] }
 0x11d   : > { %v1827_v59 = vpop.f32.mrf.mxu0  ;;  %914 = vmatpush1.msra.mxu1 %v762_v53  ;;  %v745_v53 = vmax.f32 %v628_v20, 0.0  ;;  %v598_v10 = vadd.f32 %v1793_v6, %v338_v50  ;;  %v590_v31 = vadd.f32 %v1787_v3, %v333_v55  ;;  %v736_v7 = vmax.f32 %v602_v63, 0.0  ;;  %v786_v63 = vld [vmem:[%s2015_s3 + $0x30] sm:$0xff] }
 0x11e   : > { %915 = vmatprep.subr.mxu1 %v761_v56 }
 0x11f   : > { %v1829_v2 = vpop.f32.mrf.mxu0  ;;  %916 = vmatpush1.msra.mxu1 %v760_v58  ;;  %v608_v58 = vadd.f32 %v1799_v9, %v348_v26  ;;  %v596_v9 = vadd.f32 %v1791_v5, %v338_v50 }
 0x120   : > { %917 = vmatprep.subr.mxu1 %v759_v61  ;;  %v448_v13 = vpop.permute.xlu0 %447 }
 0x121   : > { %v1831_v30 = vpop.f32.mrf.mxu0  ;;  %918 = vmatpush1.msra.mxu1 %v758_v1  ;;  %v443_v1 = vpop.permute.xlu1 %442  ;;  %v738_v28 = vmax.f32 %v608_v58, 0.0  ;;  %v734_v6 = vmax.f32 %v596_v9, 0.0  ;;  %v792_v9 = vld [vmem:[%s2015_s3 + $0x60] sm:$0xff] }
 0x122   : > { %919 = vmatprep.subr.mxu1 %v757_v25  ;;  %v739_v25 = vmax.f32 %v610_v14, 0.0 }
 0x123   : > { %v1833_v39 = vpop.f32.mrf.mxu0  ;;  %920 = vmatpush1.msra.mxu1 %v756_v34  ;;  %v592_v34 = vadd.f32 %v1789_v4, %v333_v55  ;;  %v732_v4 = vmax.f32 %v590_v31, 0.0  ;;  %v799_v31 = vld [vmem:[%s2015_s3 + $0x98] sm:$0xff] }
 0x124   : > { %921 = vmatprep.subr.mxu1 %v755_v36  ;;  %v438_v36 = vpop.permute.xlu0 %437 }
 0x125   : > { %v1837_v35 = vpop.f32.mrf.mxu0  ;;  %922 = vmatpush1.msra.mxu1 %v754_v37  ;;  %v735_v37 = vmax.f32 %v598_v10, 0.0  ;;  %v433_v27 = vpop.permute.xlu1 %432  ;;  %v733_v5 = vmax.f32 %v592_v34, 0.0  ;;  %v790_v10 = vld [vmem:[%s2015_s3 + $0x50] sm:$0xff]  ;;  %v797_v34 = vld [vmem:[%s2015_s3 + $0x88] sm:$0xff] }
 0x126   : > { %923 = vmatprep.subr.mxu1 %v753_v33 }
 0x127   : > { %v1841_v44 = vpop.f32.mrf.mxu0  ;;  %924 = vmatpush1.msra.mxu1 %v752_v24 }
 0x128   : > { %925 = vmatprep.subr.mxu1 %v751_v42  ;;  %v428_v21 = vpop.permute.xlu0 %427 }
 0x129   : > { %v1845_v47 = vpop.f32.mrf.mxu0  ;;  %926 = vmatpush1.msra.mxu1 %v750_v43  ;;  %v423_v19 = vpop.permute.xlu1 %422  ;;  %v704_v17 = vadd.f32 %v1837_v35, %v428_v21 }
 0x12a   : > { %927 = vmatprep.subr.mxu1 %v749_v45  ;;  %v700_v16 = vadd.f32 %v1833_v39, %v423_v19  ;;  %v698_v55 = vadd.f32 %v1831_v30, %v423_v19 }
 0x12b   : > { %v711_v52 = vpop.f32.mrf.mxu0  ;;  %928 = vmatpush1.msra.mxu1 %v748_v40  ;;  %v710_v40 = vadd.f32 %v1845_v47, %v433_v27  ;;  %v770_v14 = vmax.f32 %v704_v17, 0.0 }
 0x12c   : > { %929 = vmatprep.subr.mxu1 %v747_v49  ;;  %v712_v20 = vadd.f32 %v711_v52, %v433_v27  ;;  %v706_v49 = vadd.f32 %v1841_v44, %v428_v21  ;;  %v418_v52 = vpop.permute.xlu0 %417  ;;  %v768_v58 = vmax.f32 %v698_v55, 0.0 }
 0x12d   : > { %v715_v56 = vpop.f32.mrf.mxu0  ;;  %930 = vmatpush1.msra.mxu1 %v746_v46  ;;  %v772_v15 = vmax.f32 %v710_v40, 0.0  ;;  %v694_v47 = vadd.f32 %v1829_v2, %v418_v52  ;;  %v413_v44 = vpop.permute.xlu1 %412 }
 0x12e   : > { %931 = vmatprep.subr.mxu1 %v745_v53  ;;  %v716_v38 = vadd.f32 %v715_v56, %v438_v36  ;;  %v773_v53 = vmax.f32 %v712_v20, 0.0  ;;  %v692_v56 = vadd.f32 %v1827_v59, %v418_v52  ;;  %v688_v35 = vadd.f32 %v1825_v54, %v413_v44  ;;  %v780_v59 = vld [vmem:[%s2015_s3] sm:$0xff]  ;;  %v783_v54 = vld [vmem:[%s2015_s3 + $0x18] sm:$0xff] }
 0x12f   : > { %v717_v61 = vpop.f32.mrf.mxu0  ;;  %932 = vmatpush1.msra.mxu1 %v744_v51  ;;  %v771_v51 = vmax.f32 %v706_v49, 0.0  ;;  %v686_v39 = vadd.f32 %v1823_v48, %v413_v44  ;;  %v767_v30 = vmax.f32 %v694_v47, 0.0  ;;  %v782_v48 = vld [vmem:[%s2015_s3 + $0x10] sm:$0xff] }
 0x130   : > { %933 = vmatprep.subr.mxu1 %v743_v57  ;;  %v718_v42 = vadd.f32 %v717_v61, %v438_v36  ;;  %v774_v46 = vmax.f32 %v716_v38, 0.0  ;;  %v769_v57 = vmax.f32 %v700_v16, 0.0  ;;  %v765_v2 = vmax.f32 %v688_v35, 0.0  ;;  %v785_v61 = vld [vmem:[%s2015_s3 + $0x28] sm:$0xff]  ;;  %v874_v40 = vpop.permute.xlu0 %873 }
 0x131   : > { %v721_v23 = vpop.f32.mrf.mxu0  ;;  %934 = vmatpush1.msra.mxu1 %v742_v60  ;;  %v764_v60 = vmax.f32 %v686_v39, 0.0  ;;  %v801_v36 = vld [vmem:[%s2015_s3 + $0xa8] sm:$0xff]  ;;  %v869_v49 = vpop.permute.xlu1 %868 }
 0x132   : > { %935 = vmatprep.subr.mxu1 %v741_v62  ;;  %v722_v22 = vadd.f32 %v721_v23, %v443_v1  ;;  %v775_v50 = vmax.f32 %v718_v42, 0.0  ;;  %v787_v62 = vld [vmem:[%s2015_s3 + $0x38] sm:$0xff] }
 0x133   : > { %v723_v32 = vpop.f32.mrf.mxu0  ;;  %936 = vmatpush1.msra.mxu1 %v740_v11  ;;  %v789_v11 = vld [vmem:[%s2015_s3 + $0x48] sm:$0xff]  ;;  %v791_v23 = vld [vmem:[%s2015_s3 + $0x58] sm:$0xff] }
 0x134   : > { %937 = vmatprep.subr.mxu1 %v739_v25  ;;  %v724_v41 = vadd.f32 %v723_v32, %v443_v1  ;;  %v776_v18 = vmax.f32 %v722_v22, 0.0  ;;  %v788_v1 = vld [vmem:[%s2015_s3 + $0x40] sm:$0xff]  ;;  %v793_v25 = vld [vmem:[%s2015_s3 + $0x68] sm:$0xff]  ;;  %v794_v32 = vld [vmem:[%s2015_s3 + $0x70] sm:$0xff] }
 0x135   : > { %v727_v29 = vpop.f32.mrf.mxu0  ;;  %938 = vmatpush1.msra.mxu1 %v738_v28  ;;  %v795_v28 = vld [vmem:[%s2015_s3 + $0x78] sm:$0xff] }
 0x136   : > { %939 = vmatprep.subr.mxu1 %v737_v8  ;;  %v728_v33 = vadd.f32 %v727_v29, %v448_v13  ;;  %v777_v45 = vmax.f32 %v724_v41, 0.0  ;;  %v796_v8 = vld [vmem:[%s2015_s3 + $0x80] sm:$0xff] }
 0x137   : > { %v729_v26 = vpop.f32.mrf.mxu0  ;;  %940 = vmatpush1.msra.mxu1 %v736_v7  ;;  %v798_v7 = vld [vmem:[%s2015_s3 + $0x90] sm:$0xff]  ;;  %v800_v29 = vld [vmem:[%s2015_s3 + $0xa0] sm:$0xff] }
 0x138   : > { %v730_v24 = vadd.f32 %v729_v26, %v448_v13  ;;  %941 = vmatprep.subr.mxu1 %v735_v37  ;;  %v778_v43 = vmax.f32 %v728_v33, 0.0  ;;  %v766_v13 = vmax.f32 %v692_v56, 0.0  ;;  %v803_v37 = vld [vmem:[%s2015_s3 + $0xb8] sm:$0xff] }
 0x139   : > { %942 = vmatpush1.msra.mxu1 %v734_v6  ;;  %v802_v6 = vld [vmem:[%s2015_s3 + $0xb0] sm:$0xff] }
 0x13a   : > { %v779_v3 = vmax.f32 %v730_v24, 0.0  ;;  %943 = vmatprep.subr.mxu1 %v733_v5 }
 0x13b   : > { %944 = vmatpush1.msra.mxu1 %v732_v4 }
 0x13c   : > { %961 = vmatprep.subr.mxu1 %v779_v3 }
 0x13d   : > { %962 = vmatpush2.msra.mxu1 %v778_v43 }
 0x13e   : > { %963 = vmatprep.subr.mxu1 %v777_v45 }
 0x13f   : > { %964 = vmatpush2.msra.mxu1 %v776_v18 }
 0x140   : > { %965 = vmatprep.subr.mxu1 %v775_v50 }
 0x141   : > { %966 = vmatpush2.msra.mxu1 %v774_v46  ;;  %v864_v46 = vpop.permute.xlu0 %863 }
 0x142   : > { %967 = vmatprep.subr.mxu1 %v773_v53  ;;  %v859_v53 = vpop.permute.xlu1 %858 }
 0x143   : > { %968 = vmatpush2.msra.mxu1 %v772_v15 }
 0x144   : > { %969 = vmatprep.subr.mxu1 %v771_v51 }
 0x145   : > { %970 = vmatpush2.msra.mxu1 %v770_v14  ;;  %v854_v15 = vpop.permute.xlu0 %853 }
 0x146   : > { %971 = vmatprep.subr.mxu1 %v769_v57  ;;  %v849_v14 = vpop.permute.xlu1 %848 }
 0x147   : > { %972 = vmatpush2.msra.mxu1 %v768_v58 }
 0x148   : > { %973 = vmatprep.subr.mxu1 %v767_v30 }
 0x149   : > { %974 = vmatpush2.msra.mxu1 %v766_v13 }
 0x14a   : > { %975 = vmatprep.subr.mxu1 %v765_v2 }
 0x14b   : > { %976 = vmatpush2.msra.mxu1 %v764_v60  ;;  %v844_v60 = vpop.permute.xlu0 %843 }
 0x14c   : > { %978 = vmatmul.mubr.f32.vlgmr.msra.gmra.mxu1 %v780_v59 }
 0x14d   : > { %1322 = vmatprep.mubr.msk.f32.mxu1 %vm876_vm1, %v783_v54 }
 0x150   : > { %984 = vmatmul.mubr.f32.gmra.mxu1 %v782_v48 }
 0x151   : > { %1323 = vmatprep.mubr.msk.f32.mxu1 %vm876_vm1, %v785_v61 }
 0x154   : > { %990 = vmatmul.mubr.f32.gmra.mxu1 %v784_v12  ;;  %v839_v12 = vpop.permute.xlu1 %838 }
 0x155   : > { %1324 = vmatprep.mubr.msk.f32.mxu1 %vm876_vm1, %v787_v62 }
 0x158   : > { %996 = vmatmul.mubr.f32.gmra.mxu1 %v786_v63 }
 0x159   : > { %1325 = vmatprep.mubr.msk.f32.mxu1 %vm876_vm1, %v789_v11 }
 0x15c   : > { %1002 = vmatmul.mubr.f32.gmra.mxu1 %v788_v1 }
 0x15d   : > { %1326 = vmatprep.mubr.msk.f32.mxu1 %vm876_vm1, %v791_v23 }
 0x160   : > { %1008 = vmatmul.mubr.f32.gmra.mxu1 %v790_v10 }
 0x161   : > { %1327 = vmatprep.mubr.msk.f32.mxu1 %vm876_vm1, %v793_v25 }
 0x164   : > { %1014 = vmatmul.mubr.f32.gmra.mxu1 %v792_v9 }
 0x165   : > { %1328 = vmatprep.mubr.msk.f32.mxu1 %vm876_vm1, %v795_v28  ;;  %v834_v28 = vpop.permute.xlu0 %833 }
 0x168   : > { %1020 = vmatmul.mubr.f32.gmra.mxu1 %v794_v32 }
 0x169   : > { %1329 = vmatprep.mubr.msk.f32.mxu1 %vm876_vm1, %v797_v34 }
 0x16c   : > { %1026 = vmatmul.mubr.f32.gmra.mxu1 %v796_v8 }
 0x16d   : > { %1330 = vmatprep.mubr.msk.f32.mxu1 %vm876_vm1, %v799_v31 }
 0x170   : > { %1032 = vmatmul.mubr.f32.gmra.mxu1 %v798_v7  ;;  %v829_v7 = vpop.permute.xlu1 %828 }
 0x171   : > { %1331 = vmatprep.mubr.msk.f32.mxu1 %vm876_vm1, %v801_v36 }
 0x174   : > { %1038 = vmatmul.mubr.f32.gmra.mxu1 %v800_v29 }
 0x175   : > { %1332 = vmatprep.mubr.msk.f32.mxu1 %vm876_vm1, %v803_v37 }
 0x178   : > { %1044 = vmatmul.mubr.f32.gmra.mxu1 %v802_v6 }
 0x179   : > { %1149 = vmatprep.mubr.f32.mxu1 %v1452_v0 }
 0x20c   : > { %v1949_v27 = vpop.f32.mrf.mxu1 }
 0x20e   : > { %v1951_v33 = vpop.f32.mrf.mxu1 }
 0x210   : > { %v1953_v26 = vpop.f32.mrf.mxu1 }
 0x212   : > { %v1955_v5 = vpop.f32.mrf.mxu1 }
 0x214   : > { %v1957_v41 = vpop.f32.mrf.mxu1 }
 0x216   : > { %v1959_v24 = vpop.f32.mrf.mxu1 }
 0x218   : > { %v1961_v4 = vpop.f32.mrf.mxu1 }
 0x21a   : > { %v1963_v22 = vpop.f32.mrf.mxu1 }
 0x21b   : > { %v1000_v37 = vadd.f32 %v1963_v22, %v834_v28  ;;  %v819_v22 = vpop.permute.xlu1 %818 }
 0x21c   : > { %v1003_v42 = vpop.f32.mrf.mxu1 }
 0x21d   : > { %v1004_v36 = vadd.f32 %v1003_v42, %v839_v12 }
 0x21e   : > { %v1005_v3 = vpop.f32.mrf.mxu1 }
 0x21f   : > { %v1006_v8 = vadd.f32 %v1005_v3, %v839_v12  ;;  %v992_v3 = vadd.f32 %v1957_v41, %v829_v7 }
 0x220   : > { %v1009_v21 = vpop.f32.mrf.mxu1 }
 0x221   : > { %v1010_v32 = vadd.f32 %v1009_v21, %v844_v60  ;;  %v1059_v21 = vmax.f32 %v1006_v8, 0.0 }
 0x222   : > { %v1011_v0 = vpop.f32.mrf.mxu1 }
 0x223   : > { %v1012_v25 = vadd.f32 %v1011_v0, %v844_v60  ;;  %v1060_v0 = vmax.f32 %v1010_v32, 0.0 }
 0x224   : > { %v1015_v38 = vpop.f32.mrf.mxu1 }
 0x225   : > { %v1016_v23 = vadd.f32 %v1015_v38, %v849_v14  ;;  %v1061_v6 = vmax.f32 %v1012_v25, 0.0  ;;  %v998_v38 = vadd.f32 %v1961_v4, %v834_v28  ;;  %v982_v4 = vadd.f32 %v1951_v33, %v819_v22  ;;  %v1074_v33 = vld [vmem:[%s2017_s5] sm:$0x7] }
 0x226   : > { %v1017_v43 = vpop.f32.mrf.mxu1  ;;  %v1454_v25 = vmov 1966171168  }
 0x227   : > { %v1018_v11 = vadd.f32 %v1017_v43, %v849_v14  ;;  %v1062_v29 = vmax.f32 %v1016_v23, 0.0  ;;  %v994_v43 = vadd.f32 %v1959_v24, %v829_v7  ;;  %v980_v24 = vadd.f32 %v1949_v27, %v819_v22  ;;  %v1388_v27 = vld [vmem:[%s1558_s23] sm:$0xff] }
 0x228   : > { %v1021_v20 = vpop.f32.mrf.mxu1 }
 0x229   : > { %v1022_v62 = vadd.f32 %v1021_v20, %v854_v15  ;;  %v1063_v31 = vmax.f32 %v1018_v11, 0.0  ;;  %v824_v20 = vpop.permute.xlu0 %823 }
 0x22a   : > { %v1023_v45 = vpop.f32.mrf.mxu1  ;;  %v988_v42 = vadd.f32 %v1955_v5, %v824_v20 }
 0x22b   : > { %v1024_v48 = vadd.f32 %v1023_v45, %v854_v15  ;;  %v1064_v34 = vmax.f32 %v1022_v62, 0.0  ;;  %v1058_v45 = vmax.f32 %v1004_v36, 0.0 }
 0x22c   : > { %v1027_v19 = vpop.f32.mrf.mxu1  ;;  %v1053_v41 = vmax.f32 %v988_v42, 0.0 }
 0x22d   : > { %v1028_v59 = vadd.f32 %v1027_v19, %v859_v53  ;;  %v1065_v9 = vmax.f32 %v1024_v48, 0.0  ;;  %v1057_v19 = vmax.f32 %v1000_v37, 0.0 }
 0x22e   : > { %v1029_v18 = vpop.f32.mrf.mxu1 }
 0x22f   : > { %v1030_v13 = vadd.f32 %v1029_v18, %v859_v53  ;;  %v1066_v10 = vmax.f32 %v1028_v59, 0.0  ;;  %v1056_v18 = vmax.f32 %v998_v38, 0.0 }
 0x230   : > { %v1033_v50 = vpop.f32.mrf.mxu1 }
 0x231   : > { %v1034_v58 = vadd.f32 %v1033_v50, %v864_v46  ;;  %v1067_v1 = vmax.f32 %v1030_v13, 0.0  ;;  %v1054_v50 = vmax.f32 %v992_v3, 0.0  ;;  %v1079_v13 = vpop.permute.xlu0 %1078 }
 0x232   : > { %v1035_v17 = vpop.f32.mrf.mxu1 }
 0x233   : > { %v1036_v57 = vadd.f32 %v1035_v17, %v864_v46  ;;  %v1068_v63 = vmax.f32 %v1034_v58, 0.0  ;;  %v1051_v17 = vmax.f32 %v982_v4, 0.0  ;;  %v1050_v46 = vmax.f32 %v980_v24, 0.0 }
 0x234   : > { %v1039_v16 = vpop.f32.mrf.mxu1 }
 0x235   : > { %v1040_v35 = vadd.f32 %v1039_v16, %v869_v49  ;;  %v1069_v61 = vmax.f32 %v1036_v57, 0.0  ;;  %v1389_v16 = vld [vmem:[%s1558_s23 + $0x8] sm:$0xff]  ;;  %s270_s23 = sand.u32 1, %s1442_s25  }
 0x236   : > { %v1041_v52 = vpop.f32.mrf.mxu1  ;;  %v1157_v53 = vfloor.f32 %v1389_v16  ;;  %s1294_s20 = sshll.u32 %s270_s23, 1  ;;  %s1217_s14 = scalar_lea.sflag [#allocation3], %s270_s23 }
 0x237   : > { %v1042_v44 = vadd.f32 %v1041_v52, %v869_v49  ;;  %v1070_v54 = vmax.f32 %v1040_v35, 0.0  ;;  %v1055_v49 = vmax.f32 %v994_v43, 0.0  ;;  %s272_s22 = scalar_lea.vmem [#allocation2], %s1294_s20 }
 0x238   : > { %v1045_v55 = vpop.f32.mrf.mxu1  ;;  %s1231_s29 = sshll.u32 %s272_s22, 4  ;;  %s1232_s29 = int_to_ptr.vmem [resolvable:$true] %s1231_s29 }
 0x239   : > { %v1046_v47 = vadd.f32 %v1045_v55, %v874_v40  ;;  %v1071_v2 = vmax.f32 %v1042_v44, 0.0  ;;  %v1159_v55 = vmax.f32 %v1157_v53, 0.0  ;;  %s1390_s15 = scalar_lea.vmem %s1232_s29, 32  ;;  %p1397_p0 = scmp.lt.s32.totalorder %s1232_s29, %s1395_s17 }
 0x23a   : > { %v1047_v51 = vpop.f32.mrf.mxu1  ;;  %p1391_p11 = scmp.ne.s32.totalorder %s1232_s29, %s1390_s15  ;;  %p1398_p1 = scmp.lt.s32.totalorder %s1396_s28, %s1390_s15 }
 0x23b   : > { %v1048_v56 = vadd.f32 %v1047_v51, %v874_v40  ;;  %v1072_v30 = vmax.f32 %v1046_v47, 0.0  ;;  %v986_v40 = vadd.f32 %v1953_v26, %v824_v20  ;;  %v1156_v26 = vfloor.f32 %v1388_v27 }
 0x23c   : > { %v1164_v47 = vlaneseq  ;;  %v1161_v51 = vmin.f32 %v1159_v55, 2.0  ;;  %p1392_p12 = pnand %p1391_p11, %p1534_p5  ;;  %p1399_p2 = por %p1398_p1, %p1397_p0 }
 0x23d   : > { %v1073_v39 = vmax.f32 %v1048_v56, 0.0  ;;  %v1052_v5 = vmax.f32 %v986_v40, 0.0  ;;  %v1158_v52 = vmax.f32 %v1156_v26, 0.0 }
 0x23e   : > { %v1165_v56 = vshrl.u32 %v1164_v47, 7  ;;  %v1342_v14 = vtrunc.f32 %v1161_v51  ;;  %vm1213_vm6 = vcmp.lt.s32.totalorder %v1164_v47, 256  ;;  %p1393_p13 = pneg %p1392_p12 }
 0x23f   : > { %1093 = vmatprep.subr.mxu1 %v1073_v39  ;;  %v1160_v15 = vmin.f32 %v1158_v52, 2.0 }
 0x240   : > { %1094 = vmatpush1.msra.mxu1 %v1072_v30  ;;  %v1168_v57 = vsub.s32 7, %v1165_v56  ;;  %v1343_v39 = vcvt.f32.s32 %v1342_v14  ;;  %p1400_p3 = pnand %p1399_p2, %p1393_p13 }
 0x241   : > { %1095 = vmatprep.subr.mxu1 %v1071_v2  ;;  %v1340_v44 = vtrunc.f32 %v1160_v15 }
 0x242   : > { %1096 = vmatpush1.msra.mxu1 %v1070_v54  ;;  %v1173_v30 = vrot.slane %v1343_v39, %v1168_v57 }
 0x243   : > { %1097 = vmatprep.subr.mxu1 %v1069_v61  ;;  %v1341_v35 = vcvt.f32.s32 %v1340_v44 }
 0x244   : > { %1098 = vmatpush1.msra.mxu1 %v1068_v63  ;;  %vm1175_vm5 = vcmp.eq.s32.totalorder %v1165_v56, %v1173_v30 }
 0x245   : > { %1099 = vmatprep.subr.mxu1 %v1067_v1  ;;  %v1169_v58 = vrot.slane %v1341_v35, %v1168_v57 }
 0x246   : > { %1100 = vmatpush1.msra.mxu1 %v1066_v10 }
 0x247   : > { %1101 = vmatprep.subr.mxu1 %v1065_v9  ;;  %vm1174_vm3 = vcmp.eq.s32.totalorder %v1165_v56, %v1169_v58  ;;  %v1197_v9 = vunpack.c.l.s4 %v1454_v25 }
 0x248   : > { %1102 = vmatpush1.msra.mxu1 %v1064_v34 }
 0x249   : > { %1103 = vmatprep.subr.mxu1 %v1063_v31  ;;  %v1198_v31 = vunpack.c.0.s8 %v1197_v9 }
 0x24a   : > { %1104 = vmatpush1.msra.mxu1 %v1062_v29 }
 0x24b   : > { %1105 = vmatprep.subr.mxu1 %v1061_v6  ;;  %v1201_v37 = vsub.s32 %v1198_v31, %v1165_v56 }
 0x24c   : > { %1106 = vmatpush1.msra.mxu1 %v1060_v0 }
 0x24d   : > { %1107 = vmatprep.subr.mxu1 %v1059_v21 }
 0x24e   : > { %1108 = vmatpush1.msra.mxu1 %v1058_v45 }
 0x24f   : > { %1109 = vmatprep.subr.mxu1 %v1057_v19 }
 0x250   : > { %1110 = vmatpush1.msra.mxu1 %v1056_v18 }
 0x251   : > { %1111 = vmatprep.subr.mxu1 %v1055_v49 }
 0x252   : > { %1112 = vmatpush1.msra.mxu1 %v1054_v50 }
 0x253   : > { %1113 = vmatprep.subr.mxu1 %v1053_v41 }
 0x254   : > { %1114 = vmatpush1.msra.mxu1 %v1052_v5 }
 0x255   : > { %1115 = vmatprep.subr.mxu1 %v1051_v17 }
 0x256   : > { %1116 = vmatpush1.msra.mxu1 %v1050_v46 }
 0x257   : > { %1333 = vmatmul.mubr.msk.f32.vlgmr.msra.gmra.mxu1 %vm1081_vm2, %v1074_v33 }
 0x317   : > { %v1151_v2 = vpop.f32.mrf.mxu1 }
 0x318   : > { %v1152_v60 = vadd.f32 %v1151_v2, %v1079_v13 }
 0x319   : > { %v1153_v59 = vpop.f32.mrf.mxu1 }
 0x31a   : > { %v1176_v54 = vsel %vm1174_vm3, %v1152_v60, 0.0  ;;  %v1154_v48 = vadd.f32 %v1153_v59, %v1079_v13 }
 0x31b   : > { %v1179_v61 = vsel %vm1178_vm4, %v1176_v54, 0.0 }
 0x31c   : > { %v1180_v12 = vrot.slane %v1179_v61, 4  ;;  %v1177_v62 = vsel %vm1175_vm5, %v1154_v48, 0.0 }
 0x31d   : > { %v1186_v63 = vsel %vm1178_vm4, %v1177_v62, 0.0 }
 0x31e   : > { %v1181_v11 = vadd.f32 %v1180_v12, %v1179_v61  ;;  %v1187_v1 = vrot.slane %v1186_v63, 4 }
 0x320   : > { %v1182_v23 = vrot.slane %v1181_v11, 2  ;;  %v1188_v10 = vadd.f32 %v1187_v1, %v1186_v63 }
 0x322   : > { %v1183_v28 = vadd.f32 %v1182_v23, %v1181_v11  ;;  %v1189_v32 = vrot.slane %v1188_v10, 2 }
 0x324   : > { %v1184_v34 = vrot.slane %v1183_v28, 1  ;;  %v1190_v8 = vadd.f32 %v1189_v32, %v1188_v10 }
 0x326   : > { %v1191_v7 = vrot.slane %v1190_v8, 1  ;;  %v1185_v36 = vadd.f32 %v1184_v34, %v1183_v28 }
 0x328   : > { %v1192_v29 = vadd.f32 %v1191_v7, %v1190_v8 }
 0x32a   : > { %v1195_v6 = vcombine.low %v1185_v36, %v1192_v29 }
 0x32c   : > { %v1202_v38 = vrot.slane %v1195_v6, %v1201_v37 }
 0x32e   : > { %v1209_v0 = vrot.slane %v1202_v38, %v1201_v37 }
 0x330   : > { %1215 = vst.msk [vmem:[%s272_s22] sm:$0x3] %vm1213_vm6, %v1209_v0 }
 0x331   : > { %1403 = shalt.err (!%p1400_p3)
}
 0x332   : > { %s1404_s18 = scalar_lea.hbm %s1229_s13, 32  ;;  %s1408_s20 = scalar_lea.hbm %s2019_s7, 64 }
 0x333   : > { %p1405_p4 = scmp.ne.s32.totalorder %s1229_s13, %s1404_s18  ;;  %p1409_p9 = scmp.lt.s32.totalorder %s1229_s13, %s2019_s7 }
 0x334   : > { %p1410_p10 = scmp.lt.s32.totalorder %s1408_s20, %s1404_s18 }
 0x335   : > { %p1406_p7 = pnand %p1405_p4, %p1534_p5 }
 0x336   : > { %p1411_p11 = por %p1410_p10, %p1409_p9 }
 0x337   : > { %p1407_p8 = pneg %p1406_p7 }
 0x339   : > { %p1412_p12 = pnand %p1411_p11, %p1407_p8 }
 0x33b   : > { %1415 = shalt.err (!%p1412_p12)
}
 0x33c   : > { %1344 = dma.vmem_to_hbm [thread:$0]  (%p1534_p5), %s1232_s29, 32, %s1229_s13, %s1217_s14  }
 0x33d PF: > { %p1350_p13 = scmp.ge.s32.totalorder %s1450_s27, 2  ;;  %s1243_s8 = sand.u32 1, %s1438_s24  }
 0x33e   : > { %s1244_s9 = scalar_lea.sflag [#allocation3], %s1243_s8 }
 0x33f   : > { %p1347_p0 = pnand %p1350_p13, %p1538_p6 }
 0x341   : > { %p1348_p1 = pneg %p1347_p0 }
 0x343   : > { %1433 = dma.done.wait (%p1348_p1), %s1244_s9, 32  }
 0x344   : > { %1435 = vsyncadd (%p1348_p1), %s1244_s9, 4294967264  ;;  %p17_p2 = scmp.ge.s32.totalorder %s1521_s30, 4   ;;  %s2022_s24 = smov %s1442_s25 }
 0x345   : > { %s2023_s25 = smov %s1446_s26  ;;  %s2024_s26 = smov %s1532_s10 }
 0x346   : > { %s2025_s27 = smov %s1521_s30  ;;  %19 = sbr.rel (!%p17_p2) target bundleno = 3 (0x3), region = 83 }
 0x34b   :  { %1249 = vsyncpa [#allocation3], 1 }
 0x34c   :  { %1251 = vsyncpa [#allocation3 + $0x1], 1 }

</bundles_post_ra>
